<compile_context>
chip_gen: v5e
topology: v5e:2x2
jax: 0.10.0
libtpu: 0.0.40
codegen_flags: <defaults>
</compile_context>

<pallas_src>
import jax
import jax.numpy as jnp
from jax.experimental import pallas as pl
from jax.experimental.pallas import tpu as pltpu


def _round_up(a, b):
    return (a + b - 1) // b * b


def _largest_tile(total, requested, quantum=128):
    """Largest multiple-of-`quantum` divisor of `total` that is <= requested."""
    if total % quantum != 0:
        return total  # irregular hidden width: use it whole (single d_ff step)
    t = max(quantum, (min(requested, total) // quantum) * quantum)
    while total % t != 0:
        t -= quantum
    return t


def _vmem_budget_bytes():
    phys = None
    try:
        info = pltpu.get_tpu_info()
        phys = getattr(info, "vmem_capacity_bytes", None)
    except Exception:
        phys = None
    if not phys:
        phys = 64 * 1024 * 1024  # conservative default (v7x per-core VMEM)
    return int(phys * 0.85)


# --------------------------------------------------------------------------- #
# Kernels
# --------------------------------------------------------------------------- #
def _ffn_resident_kernel(x_ref, w1_ref, b1_ref, w2_ref, b2_ref, out_ref):
    # Whole W1/W2 live in VMEM (constant index_map); one row tile per grid step.
    h = jnp.dot(x_ref[...], w1_ref[...], preferred_element_type=jnp.float32)
    h = jnp.maximum(h + b1_ref[...], 0.0)  # relu(w_1(x) + b_1)
    # TODO(synk): training-mode dropout(h) not implemented (eval path: identity).
    y = jnp.dot(h.astype(w2_ref.dtype), w2_ref[...],
                preferred_element_type=jnp.float32)
    out_ref[...] = (y + b2_ref[...]).astype(out_ref.dtype)


def _ffn_streamed_kernel(x_ref, w1_ref, b1_ref, w2_ref, b2_ref, out_ref, acc_ref):
    f = pl.program_id(1)

    @pl.when(f == 0)
    def _init():
        acc_ref[...] = jnp.zeros_like(acc_ref)

    # (tm, d_model) @ (d_model, tf) -> (tm, tf), f32 accumulation on the MXU.
    h = jnp.dot(x_ref[...], w1_ref[...], preferred_element_type=jnp.float32)
    h = jnp.maximum(h + b1_ref[...], 0.0)
    # TODO(synk): training-mode dropout(h) not implemented (eval path: identity).
    acc_ref[...] += jnp.dot(h.astype(w2_ref.dtype), w2_ref[...],
                            preferred_element_type=jnp.float32)

    @pl.when(f == pl.num_programs(1) - 1)
    def _finalize():
        out_ref[...] = (acc_ref[...] + b2_ref[...]).astype(out_ref.dtype)


# --------------------------------------------------------------------------- #
# Wrapper
# --------------------------------------------------------------------------- #
def positionwise_feed_forward(x, w1, b1, w2, b2, *, tm=256, tf=512,
                              compute_dtype=None, force_streamed=False):
    """Pallas FFN: relu(x @ w1 + b1) @ w2 + b2  (dropout = identity / eval mode).

    x:  [..., d_model]
    w1: [d_model, d_ff]   (= PyTorch self.w_1.weight.T)
    b1: [d_ff]            (= self.w_1.bias)
    w2: [d_ff, d_model]   (= PyTorch self.w_2.weight.T)
    b2: [d_model]         (= self.w_2.bias)
    """
    orig_shape = x.shape
    d_model = orig_shape[-1]
    d_ff = w1.shape[1]
    assert w1.shape == (d_model, d_ff)
    assert w2.shape == (d_ff, d_model)

    out_dtype = x.dtype
    if compute_dtype is None:
        compute_dtype = x.dtype
    compute_dtype = jnp.dtype(compute_dtype)
    itemsize = compute_dtype.itemsize
    out_itemsize = jnp.dtype(out_dtype).itemsize

    xf = x.reshape(-1, d_model).astype(compute_dtype)
    w1c = w1.astype(compute_dtype)
    w2c = w2.astype(compute_dtype)
    b1r = b1.astype(jnp.float32).reshape(1, d_ff)   # biases stay f32 (added to f32 acc)
    b2r = b2.astype(jnp.float32).reshape(1, d_model)
    n = xf.shape[0]

    # Row tile: sublane packing is 8 rows for 32-bit, 16 for bf16, 32 for 8-bit.
    sub = max(8, 32 // itemsize)
    tm = max(sub, min(_round_up(tm, sub), _round_up(n, sub)))
    # Keep >= 2 row tiles when possible so the "parallel" row axis can shard
    # across both TensorCores on v7x.
    if pl.cdiv(n, tm) < 2 and n > sub:
        tm = max(sub, _round_up(pl.cdiv(n, 2), sub))
    n_rows = pl.cdiv(n, tm)

    budget = _vmem_budget_bytes()
    io_bytes = 2 * tm * d_model * (itemsize + out_itemsize)  # x + out (double-buffered)
    bias_bytes = 4 * (d_ff + d_model) * 4

    # ---------------- fast path: W1/W2 fully resident in VMEM ---------------- #
    resident_need = (2 * 2 * d_model * d_ff * itemsize   # W1 + W2, 2 buffers each
                     + io_bytes + bias_bytes
                     + 2 * tm * d_ff * 4)                 # f32 hidden intermediate
    if resident_need <= budget and not force_streamed:
        out = pl.pallas_call(
            _ffn_resident_kernel,
            out_shape=jax.ShapeDtypeStruct((n, d_model), out_dtype),
            grid_spec=pltpu.PrefetchScalarGridSpec(
                num_scalar_prefetch=0,
                grid=(n_rows,),
                in_specs=[
                    pl.BlockSpec((tm, d_model), lambda i: (i, 0)),     # x row tile
                    pl.BlockSpec((d_model, d_ff), lambda i: (0, 0)),   # W1 (resident)
                    pl.BlockSpec((1, d_ff), lambda i: (0, 0)),         # b1 (resident)
                    pl.BlockSpec((d_ff, d_model), lambda i: (0, 0)),   # W2 (resident)
                    pl.BlockSpec((1, d_model), lambda i: (0, 0)),      # b2 (resident)
                ],
                out_specs=pl.BlockSpec((tm, d_model), lambda i: (i, 0)),
            ),
            compiler_params=pltpu.CompilerParams(
                dimension_semantics=("parallel",),
                vmem_limit_bytes=budget,
            ),
        )(xf, w1c, b1r, w2c, b2r)
        return out.reshape(orig_shape)

    # ------------- streamed path: tile d_ff as a reduction axis -------------- #
    tf = _largest_tile(d_ff, tf)

    def _stream_need(tm_, tf_):
        return (2 * 2 * d_model * tf_ * itemsize             # W1/W2 tiles, double-buffered
                + 2 * tm_ * d_model * (itemsize + out_itemsize)
                + tm_ * d_model * 4                          # acc scratch
                + 2 * tm_ * tf_ * 4                          # f32 hidden intermediate
                + bias_bytes)

    while _stream_need(tm, tf) > budget and tf > 128 and d_ff % 128 == 0:
        tf = _largest_tile(d_ff, tf - 128)
    while _stream_need(tm, tf) > budget and tm > sub:
        tm = max(sub, _round_up(tm // 2, sub))
    n_rows = pl.cdiv(n, tm)

    grid = (n_rows, d_ff // tf)
    out = pl.pallas_call(
        _ffn_streamed_kernel,
        out_shape=jax.ShapeDtypeStruct((n, d_model), out_dtype),
        grid_spec=pltpu.PrefetchScalarGridSpec(
            num_scalar_prefetch=0,
            grid=grid,
            in_specs=[
                pl.BlockSpec((tm, d_model), lambda i, f: (i, 0)),   # x row tile
                pl.BlockSpec((d_model, tf), lambda i, f: (0, f)),   # W1 column tile
                pl.BlockSpec((1, tf),       lambda i, f: (0, f)),   # b1 tile
                pl.BlockSpec((tf, d_model), lambda i, f: (f, 0)),   # W2 row tile
                pl.BlockSpec((1, d_model),  lambda i, f: (0, 0)),   # b2 (whole)
            ],
            out_specs=pl.BlockSpec((tm, d_model), lambda i, f: (i, 0)),
            scratch_shapes=[pltpu.VMEM((tm, d_model), jnp.float32)],
        ),
        compiler_params=pltpu.CompilerParams(
            dimension_semantics=("parallel", "arbitrary"),
            vmem_limit_bytes=budget,
        ),
    )(xf, w1c, b1r, w2c, b2r)
    return out.reshape(orig_shape)


# --------------------------------------------------------------------------- #
# Demo / self-test
# --------------------------------------------------------------------------- #
if __name__ == "__main__":
    key = jax.random.PRNGKey(0)
    kx, k1, kb1, k2, kb2 = jax.random.split(key, 5)

    # Small, lane-friendly shapes: batch=2, seq=64, d_model=128, d_ff=512.
    batch, seq, d_model, d_ff = 2, 64, 128, 512
    x = jax.random.normal(kx, (batch, seq, d_model), dtype=jnp.float32)

    # Parameters in "x @ w + b" layout (transpose of PyTorch Linear.weight).
    w1 = jax.random.normal(k1, (d_model, d_ff), dtype=jnp.float32) / jnp.sqrt(
        jnp.float32(d_model))
    b1 = 0.1 * jax.random.normal(kb1, (d_ff,), dtype=jnp.float32)
    w2 = jax.random.normal(k2, (d_ff, d_model), dtype=jnp.float32) / jnp.sqrt(
        jnp.float32(d_ff))
    b2 = 0.1 * jax.random.normal(kb2, (d_model,), dtype=jnp.float32)

    # Pure-JAX reference (dropout = identity in eval mode).
    ref = jnp.maximum(x @ w1 + b1, 0.0) @ w2 + b2

    # 1) Weight-resident fast path (weights fit VMEM at these shapes).
    out_res = positionwise_feed_forward(x, w1, b1, w2, b2)
    jax.block_until_ready(out_res)
    assert out_res.shape == ref.shape
    assert jnp.allclose(out_res, ref, atol=1e-4, rtol=1e-4), float(
        jnp.max(jnp.abs(out_res - ref)))

    # 2) Streamed (d_ff-tiled reduction) path, forced for coverage; grid=(2,4).
    out_str = positionwise_feed_forward(
        x, w1, b1, w2, b2, tm=64, tf=128, force_streamed=True)
    jax.block_until_ready(out_str)
    assert jnp.allclose(out_str, ref, atol=1e-4, rtol=1e-4), float(
        jnp.max(jnp.abs(out_str - ref)))

    # 3) bf16-fed MXU path (f32 accumulation), looser tolerance.
    out_bf16 = positionwise_feed_forward(
        x, w1, b1, w2, b2, compute_dtype=jnp.bfloat16)
    jax.block_until_ready(out_bf16)
    assert out_bf16.shape == ref.shape
    assert float(jnp.max(jnp.abs(out_bf16 - ref))) < 0.25

    print("KERNEL_OK")
</pallas_src>

<mosaic_0001>
module attributes {stable_mosaic.version = 11 : i64} {
  func.func @_ffn_resident_kernel(%arg0: i32, %arg1: memref<64x128xf32, #tpu.memory_space<vmem>>, %arg2: memref<128x512xf32, #tpu.memory_space<vmem>>, %arg3: memref<1x512xf32, #tpu.memory_space<vmem>>, %arg4: memref<512x128xf32, #tpu.memory_space<vmem>>, %arg5: memref<1x128xf32, #tpu.memory_space<vmem>>, %arg6: memref<64x128xf32, #tpu.memory_space<vmem>>) attributes {dimension_semantics = [#tpu.dimension_semantics<parallel>], iteration_bounds = array<i64: 2>, scalar_prefetch = 0 : i64, scratch_operands = 0 : i64, tpu.core_type = #tpu.core_type<tc>, window_params = [{transform_indices = @transform_0, window_bounds = array<i64: 64, 128>}, {pipeline_mode = #tpu.pipeline_mode<synchronous>, transform_indices = @transform_1, window_bounds = array<i64: 128, 512>}, {pipeline_mode = #tpu.pipeline_mode<synchronous>, transform_indices = @transform_2, window_bounds = array<i64: 1, 512>}, {pipeline_mode = #tpu.pipeline_mode<synchronous>, transform_indices = @transform_3, window_bounds = array<i64: 512, 128>}, {pipeline_mode = #tpu.pipeline_mode<synchronous>, transform_indices = @transform_4, window_bounds = array<i64: 1, 128>}, {transform_indices = @transform_5, window_bounds = array<i64: 64, 128>}]} {
    %c0 = arith.constant 0 : index
    %c0_0 = arith.constant 0 : index
    %0 = vector.load %arg1[%c0, %c0_0] : memref<64x128xf32, #tpu.memory_space<vmem>>, vector<64x128xf32>
    %c0_1 = arith.constant 0 : index
    %c0_2 = arith.constant 0 : index
    %1 = vector.load %arg2[%c0_1, %c0_2] : memref<128x512xf32, #tpu.memory_space<vmem>>, vector<128x512xf32>
    %cst = arith.constant dense<0.000000e+00> : vector<64x512xf32>
    %2 = tpu.matmul %0, %1, %cst {dimension_numbers = #tpu.dot_dimension_numbers<[1], [0], [0], [1], [0, 0, 1, 1], [], []>} : vector<64x128xf32>, vector<128x512xf32>, vector<64x512xf32> -> vector<64x512xf32>
    %c0_3 = arith.constant 0 : index
    %c0_4 = arith.constant 0 : index
    %3 = vector.load %arg3[%c0_3, %c0_4] : memref<1x512xf32, #tpu.memory_space<vmem>>, vector<1x512xf32>
    %4 = vector.broadcast %3 : vector<1x512xf32> to vector<64x512xf32>
    %5 = arith.addf %2, %4 : vector<64x512xf32>
    %cst_5 = arith.constant 0.000000e+00 : f32
    %6 = vector.broadcast %cst_5 : f32 to vector<64x512xf32>
    %7 = arith.maximumf %5, %6 : vector<64x512xf32>
    %c0_6 = arith.constant 0 : index
    %c0_7 = arith.constant 0 : index
    %8 = vector.load %arg4[%c0_6, %c0_7] : memref<512x128xf32, #tpu.memory_space<vmem>>, vector<512x128xf32>
    %cst_8 = arith.constant dense<0.000000e+00> : vector<64x128xf32>
    %9 = tpu.matmul %7, %8, %cst_8 {dimension_numbers = #tpu.dot_dimension_numbers<[1], [0], [0], [1], [0, 0, 1, 1], [], []>} : vector<64x512xf32>, vector<512x128xf32>, vector<64x128xf32> -> vector<64x128xf32>
    %c0_9 = arith.constant 0 : index
    %c0_10 = arith.constant 0 : index
    %10 = vector.load %arg5[%c0_9, %c0_10] : memref<1x128xf32, #tpu.memory_space<vmem>>, vector<1x128xf32>
    %11 = vector.broadcast %10 : vector<1x128xf32> to vector<64x128xf32>
    %12 = arith.addf %9, %11 : vector<64x128xf32>
    %c0_11 = arith.constant 0 : index
    %c0_12 = arith.constant 0 : index
    %13 = vector.load %arg6[%c0_11, %c0_12] : memref<64x128xf32, #tpu.memory_space<vmem>>, vector<64x128xf32>
    tpu.vector_store %arg6[%c0_11, %c0_12], %12 {strides = array<i32>} : memref<64x128xf32, #tpu.memory_space<vmem>>, vector<64x128xf32>,
    return
  }
  func.func @transform_0(%arg0: i32) -> (i32, i32) {
    %c0_i32 = arith.constant 0 : i32
    %c0_i32_0 = arith.constant 0 : i32
    return %arg0, %c0_i32 : i32, i32
  }
  func.func @transform_1(%arg0: i32) -> (i32, i32) {
    %c0_i32 = arith.constant 0 : i32
    %c0_i32_0 = arith.constant 0 : i32
    %c0_i32_1 = arith.constant 0 : i32
    return %c0_i32, %c0_i32_0 : i32, i32
  }
  func.func @transform_2(%arg0: i32) -> (i32, i32) {
    %c0_i32 = arith.constant 0 : i32
    %c0_i32_0 = arith.constant 0 : i32
    %c0_i32_1 = arith.constant 0 : i32
    return %c0_i32, %c0_i32_0 : i32, i32
  }
  func.func @transform_3(%arg0: i32) -> (i32, i32) {
    %c0_i32 = arith.constant 0 : i32
    %c0_i32_0 = arith.constant 0 : i32
    %c0_i32_1 = arith.constant 0 : i32
    return %c0_i32, %c0_i32_0 : i32, i32
  }
  func.func @transform_4(%arg0: i32) -> (i32, i32) {
    %c0_i32 = arith.constant 0 : i32
    %c0_i32_0 = arith.constant 0 : i32
    %c0_i32_1 = arith.constant 0 : i32
    return %c0_i32, %c0_i32_0 : i32, i32
  }
  func.func @transform_5(%arg0: i32) -> (i32, i32) {
    %c0_i32 = arith.constant 0 : i32
    %c0_i32_0 = arith.constant 0 : i32
    return %arg0, %c0_i32 : i32, i32
  }
}

</mosaic_0001>

<bundles_post_ra>
// kernel: tpu_custom_call.1
= control target key start
LH: loop header
LB: loop body
LE: loop exit
PB: predicated region body
PF: predicated region fallthrough
CT: control target
= control target key end

     0   :  { %10 = vsyncpa [#allocation3], 0  ;;  %s1514_s0 = inlined_call_operand.hbm [shape: f32[128,128], index: 0, kind: input, shape index: {}]   ;;  %s1515_s1 = inlined_call_operand.hbm [shape: f32[128,512], index: 1, kind: input, shape index: {}]   ;;  %s1516_s2 = inlined_call_operand.hbm [shape: f32[1,512], index: 2, kind: input, shape index: {}]   ;;  %s1517_s3 = inlined_call_operand.hbm [shape: f32[512,128], index: 3, kind: input, shape index: {}]   ;;  %s1518_s4 = inlined_call_operand.vmem [shape: f32[1,128], index: 4, kind: input, shape index: {}]   ;;  %s1519_s5 = inlined_call_operand.hbm [shape: f32[128,128], index: 5, kind: output, shape index: {}]  }
   0x1   :  { %12 = vsyncpa [#allocation3 + $0x1], 0 }
   0x2   :  { %13 = vsyncpa [#allocation6], 0 }
   0x3   :  { %14 = vsyncpa [#allocation9], 0 }
   0x4   :  { %15 = vsyncpa [#allocation4], 0 }
   0x5   :  { %17 = vsyncpa [#allocation4 + $0x1], 0  ;;  %s1272_s18 = smov 0   ;;  %s1274_s19 = smov 0  }
   0x6   :  { %s1276_s20 = smov 0   ;;  %s1278_s21 = smov 0  }
   0x7 LB: > { %s1293_s22 = sadd.s32 4294967295, %s1231_s21   ;;  %s931_s23 = sadd.s32 4294967294, %s1231_s21   ;;  %s1231_s21 = sphi %s1278_s21, %s1532_s21   ;;  %s1227_s20 = sphi %s1276_s20, %s1531_s20   ;;  %s1223_s19 = sphi %s1274_s19, %s1530_s19   ;;  %s1219_s18 = sphi %s1272_s18, %s1529_s18  }
   0x8   : > { %p43_p0 = scmp.ne.s32.totalorder %s1223_s19, %s1219_s18  ;;  %p44_p1 = scmp.eq.s32.totalorder %s1293_s22, 0 }
   0x9   : > { %p151_p2 = scmp.eq.s32.totalorder %s1293_s22, 1  ;;  %p157_p3 = scmp.eq.s32.totalorder %s931_s23, 1 }
   0xa   : > { %p1302_p4 = por %p44_p1, %p43_p0  ;;  %p932_p5 = scmp.ge.s32.totalorder %s1231_s21, 1 }
   0xb   : > { %p1307_p6 = por %p157_p3, %p43_p0  ;;  %p164_p7 = scmp.lt.s32.totalorder %s1231_s21, 3 }
   0xc   : > { %s175_s28 = sshll.u32 %s1515_s1, 4  ;;  %s1233_s30 = smov [#allocation5]   ;;  %s176_s28 = int_to_ptr.hbm [resolvable:$true] %s175_s28 }
   0xd   : > { %p1315_p8 = pnand %p932_p5, %p164_p7  ;;  %s177_s6 = sshll.u32 %s1233_s30, 4  ;;  %s178_s6 = int_to_ptr.vmem [resolvable:$true] %s177_s6 }
   0xe   : > { %s190_s10 = sshll.u32 %s1516_s2, 4  ;;  %s1234_s11 = smov 512   ;;  %s191_s10 = int_to_ptr.hbm [resolvable:$true] %s190_s10 }
   0xf   : > { %p969_p9 = pneg %p1315_p8  ;;  %s1235_s12 = smov 32  }
  0x10   : > { %s1236_s13 = smov [#allocation7]   ;;  %s201_s17 = sshll.u32 %s1517_s3, 4  ;;  %s202_s17 = int_to_ptr.hbm [resolvable:$true] %s201_s17 }
  0x11   : > { %p1323_p10 = pnand %p969_p9, %p44_p1  ;;  %s192_s14 = sshll.u32 %s1236_s13, 4  ;;  %s193_s14 = int_to_ptr.vmem [resolvable:$true] %s192_s14 }
  0x12   : > { %s1237_s23 = smov [#allocation8]   ;;  %s1520_s27 = smov 128  }
  0x13   : > { %972 = dma.hbm_to_vmem [thread:$0]  (!%p1323_p10), %s176_s28, 8192, %s178_s6, [#allocation6], %s1234_s11, %s1234_s11, %s1235_s12  }
  0x14   : > { %975 = dma.hbm_to_vmem [thread:$0]  (!%p1323_p10), %s191_s10, 64, %s193_s14, [#allocation6]  }
  0x15   : > { %s203_s26 = sshll.u32 %s1237_s23, 4  ;;  %s1239_s28 = smov 8   ;;  %s204_s26 = int_to_ptr.vmem [resolvable:$true] %s203_s26 }
  0x16   : > { %978 = dma.hbm_to_vmem [thread:$0]  (!%p1323_p10), %s202_s17, 8192, %s204_s26, [#allocation9], %s1520_s27, %s1520_s27, %s1239_s28  }
  0x17   : > { %s1344_s30 = sadd.s32 1, %s1231_s21   ;;  %s30_s8 = sadd.s32 1, %s1227_s20 }
  0x18   : > { %s27_s6 = ssub.s32 %s1231_s21, %s1344_s30  ;;  %p37_p13 = scmp.ne.s32.totalorder %s1227_s20, %s1223_s19 }
  0x19   : > { %p28_p12 = scmp.eq.s32.totalorder %s27_s6, 0  ;;  %p38_p0 = scmp.eq.s32.totalorder %s1231_s21, 0 }
  0x1a   : > { %p1357_p3 = por %p151_p2, %p37_p13  ;;  %p990_p5 = scmp.lt.s32.totalorder %s1231_s21, 2 }
  0x1b   : > { %s1353_s9 = scalar_select %p28_p12, %s1227_s20, %s30_s8  }
  0x1c   : > { %s220_s7 = sand.u32 1, %s1227_s20   ;;  %s951_s11 = sshll.u32 %s1231_s21, 6 }
  0x1d   : > { %p39_p7 = por %p38_p0, %p37_p13  ;;  %s937_s12 = sshll.u32 %s220_s7, 6 }
  0x1e   : > { %s229_s15 = scalar_lea.hbm %s1514_s0, %s951_s11  ;;  %s224_s17 = scalar_lea.vmem [#allocation2], %s937_s12 }
  0x1f   : > { %s230_s16 = sshll.u32 %s229_s15, 4  ;;  %s232_s23 = sshll.u32 %s224_s17, 4  ;;  %s231_s16 = int_to_ptr.hbm [resolvable:$true] %s230_s16  ;;  %s233_s23 = int_to_ptr.vmem [resolvable:$true] %s232_s23 }
  0x20   : > { %p1367_p9 = pnand %p990_p5, %p39_p7  ;;  %s221_s6 = scalar_lea.sflag [#allocation3], %s220_s7 }
  0x21   : > { %s1127_s8 = sshra.s32 %s231_s16, 4  ;;  %s1134_s12 = scalar_lea.hbm %s1514_s0, 128  ;;  %s1128_s8 = int_to_ptr.hbm [resolvable:$true] %s1127_s8 }
  0x22   : > { %s1129_s27 = scalar_lea.hbm %s1128_s8, 64  ;;  %p1131_p10 = pneg %p1367_p9 }
  0x23   : > { %p1130_p2 = scmp.ne.s32.totalorder %s1128_s8, %s1129_s27  ;;  %p1135_p0 = scmp.lt.s32.totalorder %s1128_s8, %s1514_s0 }
  0x24   : > { %p1136_p5 = scmp.lt.s32.totalorder %s1134_s12, %s1129_s27 }
  0x25   : > { %p1132_p12 = pnand %p1131_p10, %p1130_p2 }
  0x26   : > { %p1137_p7 = por %p1136_p5, %p1135_p0 }
  0x27   : > { %p1133_p13 = pneg %p1132_p12 }
  0x29   : > { %p1138_p11 = pnand %p1137_p7, %p1133_p13 }
  0x2b   : > { %1141 = shalt.err (!%p1138_p11)
}
  0x2c   : > { %s1527_s7 = smov 128   ;;  %244 = sbr.rel (%p1315_p8) target bundleno = 418 (0x1a2), region = 40 }
  0x2d   : > { %982 = dma.hbm_to_vmem [thread:$0]  (!%p1367_p9), %s231_s16, 1024, %s233_s23, %s221_s6, %s1527_s7, %s1527_s7, %s1239_s28  }
  0x2e   : > { %s1387_s17 = sand.u32 (!%p1315_p8), 1, %s1223_s19  }
  0x2f   : > { %s941_s27 = sshll.u32 (!%p1315_p8), %s1387_s17, 6  ;;  %s247_s8 = scalar_lea.sflag (!%p1315_p8), [#allocation3], %s1387_s17 }
  0x30   : > { %s1393_s11 = scalar_lea.vmem (!%p1315_p8), [#allocation2], %s941_s27 }
  0x31   : > { %1202 = dma.done.wait (%p1302_p4), %s247_s8, 1024  }
  0x32   : > { %1204 = vsyncadd (%p1302_p4), %s247_s8, 4294966272 }
  0x33   : > { %1206 = dma.done.wait (%p44_p1), [#allocation6], 8256  }
  0x34   : > { %1208 = vsyncadd (%p44_p1), [#allocation6], 4294959040 }
  0x35   : > { %1210 = dma.done.wait (%p44_p1), [#allocation9], 8192  }
  0x36   : > { %1212 = vsyncadd (%p44_p1), [#allocation9], 4294959104  ;;  %v365_v0 = vld [vmem:[#allocation5 + $0x1f0] sm:$0xff]  ;;  %v366_v2 = vld [vmem:[#allocation5 + $0x1f8] sm:$0xff]  ;;  %s1464_s28 = scalar_lea.vmem [#allocation10], %s941_s27  ;;  %s952_s16 = sshll.u32 %s1293_s22, 6 }
  0x37   : > { %v361_v1 = vld [vmem:[#allocation5 + $0x1d0] sm:$0xff]  ;;  %459 = vmatpush.msra.mxu2 %v365_v0  ;;  %500 = vmatpush.msra.mxu3 %v366_v2  ;;  %v362_v3 = vld [vmem:[#allocation5 + $0x1d8] sm:$0xff]  ;;  %v363_v6 = vld [vmem:[#allocation5 + $0x1e0] sm:$0xff]  ;;  %s825_s6 = scalar_lea.hbm %s1519_s5, %s952_s16  ;;  %s826_s13 = sshll.u32 %s1464_s28, 4  ;;  %s827_s13 = int_to_ptr.vmem [resolvable:$true] %s826_s13 }
  0x38   : > { %v357_v4 = vld [vmem:[#allocation5 + $0x1b0] sm:$0xff]  ;;  %v358_v5 = vld [vmem:[#allocation5 + $0x1b8] sm:$0xff]  ;;  %v359_v7 = vld [vmem:[#allocation5 + $0x1c0] sm:$0xff]  ;;  %377 = vmatpush.msra.mxu0 %v363_v6  ;;  %s828_s12 = sshll.u32 %s825_s6, 4  ;;  %s814_s22 = scalar_lea.sflag [#allocation4], %s1387_s17  ;;  %s829_s12 = int_to_ptr.hbm [resolvable:$true] %s828_s12 }
  0x39   : > { %460 = vmatpush.msra.mxu2 %v361_v1  ;;  %501 = vmatpush.msra.mxu3 %v362_v3  ;;  %v364_v8 = vld [vmem:[#allocation5 + $0x1e8] sm:$0xff]  ;;  %v353_v9 = vld [vmem:[#allocation5 + $0x190] sm:$0xff]  ;;  %v354_v10 = vld [vmem:[#allocation5 + $0x198] sm:$0xff]  ;;  %s1171_s14 = sshra.s32 %s829_s12, 4  ;;  %s1177_s8 = scalar_lea.hbm %s1519_s5, 128  ;;  %s1172_s14 = int_to_ptr.hbm [resolvable:$true] %s1171_s14 }
  0x3a   : > { %418 = vmatpush.msra.mxu1 %v364_v8  ;;  %v355_v11 = vld [vmem:[#allocation5 + $0x1a0] sm:$0xff]  ;;  %v360_v12 = vld [vmem:[#allocation5 + $0x1c8] sm:$0xff]  ;;  %v349_v13 = vld [vmem:[#allocation5 + $0x170] sm:$0xff]  ;;  %378 = vmatpush.msra.mxu0 %v359_v7  ;;  %s1173_s15 = scalar_lea.hbm %s1172_s14, 64  ;;  %p1178_p11 = scmp.lt.s32.totalorder %s1172_s14, %s1519_s5 }
  0x3b   : > { %461 = vmatpush.msra.mxu2 %v357_v4  ;;  %502 = vmatpush.msra.mxu3 %v358_v5  ;;  %v350_v14 = vld [vmem:[#allocation5 + $0x178] sm:$0xff]  ;;  %v356_v15 = vld [vmem:[#allocation5 + $0x1a8] sm:$0xff]  ;;  %v351_v16 = vld [vmem:[#allocation5 + $0x180] sm:$0xff]  ;;  %p1174_p1 = scmp.ne.s32.totalorder %s1172_s14, %s1173_s15  ;;  %p1179_p9 = scmp.lt.s32.totalorder %s1177_s8, %s1173_s15 }
  0x3c   : > { %419 = vmatpush.msra.mxu1 %v360_v12  ;;  %v352_v17 = vld [vmem:[#allocation5 + $0x188] sm:$0xff]  ;;  %v345_v18 = vld [vmem:[#allocation5 + $0x150] sm:$0xff]  ;;  %379 = vmatpush.msra.mxu0 %v355_v11  ;;  %v346_v19 = vld [vmem:[#allocation5 + $0x158] sm:$0xff] }
  0x3d   : > { %462 = vmatpush.msra.mxu2 %v353_v9  ;;  %503 = vmatpush.msra.mxu3 %v354_v10  ;;  %v347_v20 = vld [vmem:[#allocation5 + $0x160] sm:$0xff]  ;;  %v348_v21 = vld [vmem:[#allocation5 + $0x168] sm:$0xff]  ;;  %v341_v22 = vld [vmem:[#allocation5 + $0x130] sm:$0xff]  ;;  %p1175_p4 = pnand %p1174_p1, %p1357_p3  ;;  %p1180_p2 = por %p1179_p9, %p1178_p11 }
  0x3e   : > { %420 = vmatpush.msra.mxu1 %v356_v15  ;;  %380 = vmatpush.msra.mxu0 %v351_v16  ;;  %v342_v23 = vld [vmem:[#allocation5 + $0x138] sm:$0xff]  ;;  %v343_v24 = vld [vmem:[#allocation5 + $0x140] sm:$0xff]  ;;  %v344_v25 = vld [vmem:[#allocation5 + $0x148] sm:$0xff] }
  0x3f   : > { %463 = vmatpush.msra.mxu2 %v349_v13  ;;  %504 = vmatpush.msra.mxu3 %v350_v14  ;;  %v337_v26 = vld [vmem:[#allocation5 + $0x110] sm:$0xff]  ;;  %v338_v27 = vld [vmem:[#allocation5 + $0x118] sm:$0xff]  ;;  %v339_v28 = vld [vmem:[#allocation5 + $0x120] sm:$0xff]  ;;  %p1176_p8 = pneg %p1175_p4 }
  0x40   : > { %421 = vmatpush.msra.mxu1 %v352_v17  ;;  %381 = vmatpush.msra.mxu0 %v347_v20  ;;  %v340_v29 = vld [vmem:[#allocation5 + $0x128] sm:$0xff]  ;;  %v333_v30 = vld [vmem:[#allocation5 + $0xf0] sm:$0xff]  ;;  %v334_v31 = vld [vmem:[#allocation5 + $0xf8] sm:$0xff] }
  0x41   : > { %464 = vmatpush.msra.mxu2 %v345_v18  ;;  %505 = vmatpush.msra.mxu3 %v346_v19  ;;  %v335_v32 = vld [vmem:[#allocation5 + $0x100] sm:$0xff]  ;;  %v336_v33 = vld [vmem:[#allocation5 + $0x108] sm:$0xff]  ;;  %v329_v34 = vld [vmem:[#allocation5 + $0xd0] sm:$0xff]  ;;  %p1181_p10 = pnand %p1180_p2, %p1176_p8 }
  0x42   : > { %422 = vmatpush.msra.mxu1 %v348_v21  ;;  %382 = vmatpush.msra.mxu0 %v343_v24  ;;  %v330_v35 = vld [vmem:[#allocation5 + $0xd8] sm:$0xff]  ;;  %v331_v36 = vld [vmem:[#allocation5 + $0xe0] sm:$0xff]  ;;  %v332_v37 = vld [vmem:[#allocation5 + $0xe8] sm:$0xff] }
  0x43   : > { %465 = vmatpush.msra.mxu2 %v341_v22  ;;  %506 = vmatpush.msra.mxu3 %v342_v23  ;;  %v325_v38 = vld [vmem:[#allocation5 + $0xb0] sm:$0xff]  ;;  %v326_v39 = vld [vmem:[#allocation5 + $0xb8] sm:$0xff]  ;;  %v327_v40 = vld [vmem:[#allocation5 + $0xc0] sm:$0xff] }
  0x44   : > { %423 = vmatpush.msra.mxu1 %v344_v25  ;;  %383 = vmatpush.msra.mxu0 %v339_v28  ;;  %v328_v41 = vld [vmem:[#allocation5 + $0xc8] sm:$0xff]  ;;  %v321_v42 = vld [vmem:[#allocation5 + $0x90] sm:$0xff]  ;;  %v322_v43 = vld [vmem:[#allocation5 + $0x98] sm:$0xff] }
  0x45   : > { %466 = vmatpush.msra.mxu2 %v337_v26  ;;  %507 = vmatpush.msra.mxu3 %v338_v27  ;;  %v323_v44 = vld [vmem:[#allocation5 + $0xa0] sm:$0xff]  ;;  %v324_v45 = vld [vmem:[#allocation5 + $0xa8] sm:$0xff]  ;;  %v317_v46 = vld [vmem:[#allocation5 + $0x70] sm:$0xff] }
  0x46   : > { %424 = vmatpush.msra.mxu1 %v340_v29  ;;  %384 = vmatpush.msra.mxu0 %v335_v32  ;;  %v318_v47 = vld [vmem:[#allocation5 + $0x78] sm:$0xff]  ;;  %v319_v48 = vld [vmem:[#allocation5 + $0x80] sm:$0xff]  ;;  %v320_v49 = vld [vmem:[#allocation5 + $0x88] sm:$0xff] }
  0x47   : > { %467 = vmatpush.msra.mxu2 %v333_v30  ;;  %508 = vmatpush.msra.mxu3 %v334_v31  ;;  %v313_v50 = vld [vmem:[#allocation5 + $0x50] sm:$0xff]  ;;  %v314_v51 = vld [vmem:[#allocation5 + $0x58] sm:$0xff]  ;;  %v315_v52 = vld [vmem:[#allocation5 + $0x60] sm:$0xff] }
  0x48   : > { %425 = vmatpush.msra.mxu1 %v336_v33  ;;  %385 = vmatpush.msra.mxu0 %v331_v36  ;;  %v316_v53 = vld [vmem:[#allocation5 + $0x68] sm:$0xff]  ;;  %v309_v54 = vld [vmem:[#allocation5 + $0x30] sm:$0xff]  ;;  %v310_v55 = vld [vmem:[#allocation5 + $0x38] sm:$0xff] }
  0x49   : > { %468 = vmatpush.msra.mxu2 %v329_v34  ;;  %509 = vmatpush.msra.mxu3 %v330_v35  ;;  %v311_v56 = vld [vmem:[#allocation5 + $0x40] sm:$0xff]  ;;  %v312_v57 = vld [vmem:[#allocation5 + $0x48] sm:$0xff]  ;;  %v305_v58 = vld [vmem:[#allocation5 + $0x10] sm:$0xff] }
  0x4a   : > { %426 = vmatpush.msra.mxu1 %v332_v37  ;;  %386 = vmatpush.msra.mxu0 %v327_v40  ;;  %v306_v59 = vld [vmem:[#allocation5 + $0x18] sm:$0xff]  ;;  %v295_v60 = vld [vmem:[%s1393_s11] sm:$0xff]  ;;  %v308_v62 = vld [vmem:[#allocation5 + $0x28] sm:$0xff] }
  0x4b   : > { %469 = vmatpush.msra.mxu2 %v325_v38  ;;  %510 = vmatpush.msra.mxu3 %v326_v39  ;;  %v307_v61 = vld [vmem:[#allocation5 + $0x20] sm:$0xff]  ;;  %v304_v0 = vld [vmem:[#allocation5 + $0x8] sm:$0xff]  ;;  %v297_v2 = vld [vmem:[%s1393_s11 + $0x10] sm:$0xff] }
  0x4c   : > { %427 = vmatpush.msra.mxu1 %v328_v41  ;;  %387 = vmatpush.msra.mxu0 %v323_v44  ;;  %v303_v63 = vld [vmem:[#allocation5] sm:$0xff]  ;;  %v296_v1 = vld [vmem:[%s1393_s11 + $0x8] sm:$0xff]  ;;  %v298_v3 = vld [vmem:[%s1393_s11 + $0x18] sm:$0xff] }
  0x4d   : > { %470 = vmatpush.msra.mxu2 %v321_v42  ;;  %511 = vmatpush.msra.mxu3 %v322_v43  ;;  %v299_v4 = vld [vmem:[%s1393_s11 + $0x20] sm:$0xff]  ;;  %v619_v9 = vld [vmem:[#allocation8 + $0x170] sm:$0xff]  ;;  %v618_v13 = vld [vmem:[#allocation8 + $0x168] sm:$0xff] }
  0x4e   : > { %428 = vmatpush.msra.mxu1 %v324_v45  ;;  %388 = vmatpush.msra.mxu0 %v319_v48  ;;  %v620_v5 = vld [vmem:[#allocation8 + $0x178] sm:$0xff]  ;;  %v587_v10 = vld [vmem:[#allocation8 + $0x70] sm:$0xff]  ;;  %v586_v14 = vld [vmem:[#allocation8 + $0x68] sm:$0xff] }
  0x4f   : > { %471 = vmatpush.msra.mxu2 %v317_v46  ;;  %512 = vmatpush.msra.mxu3 %v318_v47  ;;  %v588_v6 = vld [vmem:[#allocation8 + $0x78] sm:$0xff]  ;;  %v635_v11 = vld [vmem:[#allocation8 + $0x1f0] sm:$0xff]  ;;  %v634_v15 = vld [vmem:[#allocation8 + $0x1e8] sm:$0xff] }
  0x50   : > { %429 = vmatpush.msra.mxu1 %v320_v49  ;;  %389 = vmatpush.msra.mxu0 %v315_v52  ;;  %v636_v7 = vld [vmem:[#allocation8 + $0x1f8] sm:$0xff]  ;;  %v603_v12 = vld [vmem:[#allocation8 + $0xf0] sm:$0xff]  ;;  %v602_v16 = vld [vmem:[#allocation8 + $0xe8] sm:$0xff] }
  0x51   : > { %472 = vmatpush.msra.mxu2 %v313_v50  ;;  %513 = vmatpush.msra.mxu3 %v314_v51  ;;  %v604_v8 = vld [vmem:[#allocation8 + $0xf8] sm:$0xff]  ;;  %v617_v17 = vld [vmem:[#allocation8 + $0x160] sm:$0xff]  ;;  %v615_v26 = vld [vmem:[#allocation8 + $0x150] sm:$0xff] }
  0x52   : > { %430 = vmatpush.msra.mxu1 %v316_v53  ;;  %390 = vmatpush.msra.mxu0 %v311_v56  ;;  %v585_v18 = vld [vmem:[#allocation8 + $0x60] sm:$0xff]  ;;  %v616_v21 = vld [vmem:[#allocation8 + $0x158] sm:$0xff]  ;;  %v583_v27 = vld [vmem:[#allocation8 + $0x50] sm:$0xff] }
  0x53   : > { %473 = vmatpush.msra.mxu2 %v309_v54  ;;  %514 = vmatpush.msra.mxu3 %v310_v55  ;;  %v633_v19 = vld [vmem:[#allocation8 + $0x1e0] sm:$0xff]  ;;  %v584_v22 = vld [vmem:[#allocation8 + $0x58] sm:$0xff]  ;;  %v631_v28 = vld [vmem:[#allocation8 + $0x1d0] sm:$0xff] }
  0x54   : > { %431 = vmatpush.msra.mxu1 %v312_v57  ;;  %391 = vmatpush.msra.mxu0 %v307_v61  ;;  %v601_v20 = vld [vmem:[#allocation8 + $0xe0] sm:$0xff]  ;;  %v632_v24 = vld [vmem:[#allocation8 + $0x1d8] sm:$0xff]  ;;  %v599_v29 = vld [vmem:[#allocation8 + $0xd0] sm:$0xff] }
  0x55   : > { %474 = vmatpush.msra.mxu2 %v305_v58  ;;  %515 = vmatpush.msra.mxu3 %v306_v59  ;;  %v300_v23 = vld [vmem:[%s1393_s11 + $0x28] sm:$0xff]  ;;  %v600_v25 = vld [vmem:[#allocation8 + $0xd8] sm:$0xff]  ;;  %v301_v36 = vld [vmem:[%s1393_s11 + $0x30] sm:$0xff] }
  0x56   : > { %475 = vmatmul.f32.vlgmr.msra.gmra.mxu2 %v295_v60  ;;  %516 = vmatmul.f32.vlgmr.msra.gmra.mxu3 %v295_v60  ;;  %v614_v30 = vld [vmem:[#allocation8 + $0x148] sm:$0xff]  ;;  %v613_v34 = vld [vmem:[#allocation8 + $0x140] sm:$0xff]  ;;  %v612_v39 = vld [vmem:[#allocation8 + $0x138] sm:$0xff] }
  0x57   : > { %432 = vmatpush.msra.mxu1 %v308_v62  ;;  %392 = vmatpush.msra.mxu0 %v303_v63  ;;  %v582_v31 = vld [vmem:[#allocation8 + $0x48] sm:$0xff]  ;;  %v581_v35 = vld [vmem:[#allocation8 + $0x40] sm:$0xff]  ;;  %v580_v40 = vld [vmem:[#allocation8 + $0x38] sm:$0xff] }
  0x58   : > { %393 = vmatmul.f32.vlgmr.msra.gmra.mxu0 %v295_v60  ;;  %723 = vmatpush.msrb.mxu2 %v620_v5  ;;  %v630_v32 = vld [vmem:[#allocation8 + $0x1c8] sm:$0xff]  ;;  %v629_v37 = vld [vmem:[#allocation8 + $0x1c0] sm:$0xff]  ;;  %v628_v41 = vld [vmem:[#allocation8 + $0x1b8] sm:$0xff] }
  0x59   : > { %433 = vmatpush.msra.mxu1 %v304_v0  ;;  %641 = vmatpush.msrb.mxu0 %v588_v6  ;;  %v598_v33 = vld [vmem:[#allocation8 + $0xc8] sm:$0xff]  ;;  %v597_v38 = vld [vmem:[#allocation8 + $0xc0] sm:$0xff]  ;;  %v596_v42 = vld [vmem:[#allocation8 + $0xb8] sm:$0xff] }
  0x5a   : > { %434 = vmatmul.f32.vlgmr.msra.gmra.mxu1 %v295_v60  ;;  %764 = vmatpush.msrb.mxu3 %v636_v7  ;;  %v611_v43 = vld [vmem:[#allocation8 + $0x130] sm:$0xff]  ;;  %v610_v47 = vld [vmem:[#allocation8 + $0x128] sm:$0xff]  ;;  %v609_v52 = vld [vmem:[#allocation8 + $0x120] sm:$0xff] }
  0x5b   : > { %682 = vmatpush.msrb.mxu1 %v604_v8  ;;  %724 = vmatpush.msrb.mxu2 %v619_v9  ;;  %v579_v44 = vld [vmem:[#allocation8 + $0x30] sm:$0xff]  ;;  %v578_v48 = vld [vmem:[#allocation8 + $0x28] sm:$0xff]  ;;  %v577_v53 = vld [vmem:[#allocation8 + $0x20] sm:$0xff] }
  0x5c   : > { %642 = vmatpush.msrb.mxu0 %v587_v10  ;;  %765 = vmatpush.msrb.mxu3 %v635_v11  ;;  %v627_v45 = vld [vmem:[#allocation8 + $0x1b0] sm:$0xff]  ;;  %v626_v50 = vld [vmem:[#allocation8 + $0x1a8] sm:$0xff]  ;;  %v625_v54 = vld [vmem:[#allocation8 + $0x1a0] sm:$0xff] }
  0x5d   : > { %683 = vmatpush.msrb.mxu1 %v603_v12  ;;  %725 = vmatpush.msrb.mxu2 %v618_v13  ;;  %v595_v46 = vld [vmem:[#allocation8 + $0xb0] sm:$0xff]  ;;  %v594_v51 = vld [vmem:[#allocation8 + $0xa8] sm:$0xff]  ;;  %v593_v55 = vld [vmem:[#allocation8 + $0xa0] sm:$0xff] }
  0x5e   : > { %478 = vmatmul.f32.gmra.mxu2 %v296_v1  ;;  %519 = vmatmul.f32.gmra.mxu3 %v296_v1  ;;  %v302_v49 = vld [vmem:[%s1393_s11 + $0x38] sm:$0xff]  ;;  %v606_v0 = vld [vmem:[#allocation8 + $0x108] sm:$0xff]  ;;  %v573_v5 = vld [vmem:[#allocation8] sm:$0xff] }
  0x5f   : > { %643 = vmatpush.msrb.mxu0 %v586_v14  ;;  %766 = vmatpush.msrb.mxu3 %v634_v15  ;;  %v608_v56 = vld [vmem:[#allocation8 + $0x118] sm:$0xff]  ;;  %v607_v60 = vld [vmem:[#allocation8 + $0x110] sm:$0xff]  ;;  %v621_v6 = vld [vmem:[#allocation8 + $0x180] sm:$0xff] }
  0x60   : > { %396 = vmatmul.f32.gmra.mxu0 %v296_v1  ;;  %684 = vmatpush.msrb.mxu1 %v602_v16  ;;  %v576_v57 = vld [vmem:[#allocation8 + $0x18] sm:$0xff]  ;;  %v575_v61 = vld [vmem:[#allocation8 + $0x10] sm:$0xff]  ;;  %v589_v7 = vld [vmem:[#allocation8 + $0x80] sm:$0xff] }
  0x61   : > { %726 = vmatpush.msrb.mxu2 %v617_v17  ;;  %644 = vmatpush.msrb.mxu0 %v585_v18  ;;  %v624_v58 = vld [vmem:[#allocation8 + $0x198] sm:$0xff]  ;;  %v623_v62 = vld [vmem:[#allocation8 + $0x190] sm:$0xff] }
  0x62   : > { %437 = vmatmul.f32.gmra.mxu1 %v296_v1  ;;  %767 = vmatpush.msrb.mxu3 %v633_v19  ;;  %v592_v59 = vld [vmem:[#allocation8 + $0x98] sm:$0xff]  ;;  %v591_v63 = vld [vmem:[#allocation8 + $0x90] sm:$0xff]  ;;  %v574_v1 = vld [vmem:[#allocation8 + $0x8] sm:$0xff] }
  0x63   : > { %685 = vmatpush.msrb.mxu1 %v601_v20  ;;  %727 = vmatpush.msrb.mxu2 %v616_v21  ;;  %v367_v8 = vld [vmem:[#allocation7] sm:$0xf] }
  0x64   : > { %645 = vmatpush.msrb.mxu0 %v584_v22  ;;  %768 = vmatpush.msrb.mxu3 %v632_v24  ;;  %v1415_v9 = vperm.slane %v367_v8, 0  ;;  %v1417_v10 = vperm.slane %v367_v8, 1  ;;  %v1419_v11 = vperm.slane %v367_v8, 2  ;;  %v1421_v12 = vperm.slane %v367_v8, 3 }
  0x65   : > { %686 = vmatpush.msrb.mxu1 %v600_v25  ;;  %728 = vmatpush.msrb.mxu2 %v615_v26 }
  0x66   : > { %481 = vmatmul.f32.gmra.mxu2 %v297_v2  ;;  %522 = vmatmul.f32.gmra.mxu3 %v297_v2 }
  0x67   : > { %646 = vmatpush.msrb.mxu0 %v583_v27  ;;  %769 = vmatpush.msrb.mxu3 %v631_v28 }
  0x68   : > { %399 = vmatmul.f32.gmra.mxu0 %v297_v2  ;;  %687 = vmatpush.msrb.mxu1 %v599_v29 }
  0x69   : > { %729 = vmatpush.msrb.mxu2 %v614_v30  ;;  %647 = vmatpush.msrb.mxu0 %v582_v31 }
  0x6a   : > { %440 = vmatmul.f32.gmra.mxu1 %v297_v2  ;;  %770 = vmatpush.msrb.mxu3 %v630_v32  ;;  %v622_v2 = vld [vmem:[#allocation8 + $0x188] sm:$0xff] }
  0x6b   : > { %688 = vmatpush.msrb.mxu1 %v598_v33  ;;  %730 = vmatpush.msrb.mxu2 %v613_v34 }
  0x6c   : > { %648 = vmatpush.msrb.mxu0 %v581_v35  ;;  %771 = vmatpush.msrb.mxu3 %v629_v37 }
  0x6d   : > { %689 = vmatpush.msrb.mxu1 %v597_v38  ;;  %731 = vmatpush.msrb.mxu2 %v612_v39 }
  0x6e   : > { %484 = vmatmul.f32.gmra.mxu2 %v298_v3  ;;  %525 = vmatmul.f32.gmra.mxu3 %v298_v3 }
  0x6f   : > { %649 = vmatpush.msrb.mxu0 %v580_v40  ;;  %772 = vmatpush.msrb.mxu3 %v628_v41 }
  0x70   : > { %402 = vmatmul.f32.gmra.mxu0 %v298_v3  ;;  %690 = vmatpush.msrb.mxu1 %v596_v42 }
  0x71   : > { %732 = vmatpush.msrb.mxu2 %v611_v43  ;;  %650 = vmatpush.msrb.mxu0 %v579_v44 }
  0x72   : > { %443 = vmatmul.f32.gmra.mxu1 %v298_v3  ;;  %773 = vmatpush.msrb.mxu3 %v627_v45  ;;  %v590_v3 = vld [vmem:[#allocation8 + $0x88] sm:$0xff] }
  0x73   : > { %691 = vmatpush.msrb.mxu1 %v595_v46  ;;  %733 = vmatpush.msrb.mxu2 %v610_v47 }
  0x74   : > { %651 = vmatpush.msrb.mxu0 %v578_v48  ;;  %774 = vmatpush.msrb.mxu3 %v626_v50 }
  0x75   : > { %692 = vmatpush.msrb.mxu1 %v594_v51  ;;  %734 = vmatpush.msrb.mxu2 %v609_v52 }
  0x76   : > { %487 = vmatmul.f32.gmra.mxu2 %v299_v4  ;;  %528 = vmatmul.f32.gmra.mxu3 %v299_v4 }
  0x77   : > { %652 = vmatpush.msrb.mxu0 %v577_v53  ;;  %775 = vmatpush.msrb.mxu3 %v625_v54 }
  0x78   : > { %405 = vmatmul.f32.gmra.mxu0 %v299_v4  ;;  %693 = vmatpush.msrb.mxu1 %v593_v55 }
  0x79   : > { %735 = vmatpush.msrb.mxu2 %v608_v56  ;;  %653 = vmatpush.msrb.mxu0 %v576_v57 }
  0x7a   : > { %446 = vmatmul.f32.gmra.mxu1 %v299_v4  ;;  %776 = vmatpush.msrb.mxu3 %v624_v58  ;;  %v605_v4 = vld [vmem:[#allocation8 + $0x100] sm:$0xff] }
  0x7b   : > { %694 = vmatpush.msrb.mxu1 %v592_v59  ;;  %736 = vmatpush.msrb.mxu2 %v607_v60 }
  0x7c   : > { %654 = vmatpush.msrb.mxu0 %v575_v61  ;;  %777 = vmatpush.msrb.mxu3 %v623_v62 }
  0x7d   : > { %695 = vmatpush.msrb.mxu1 %v591_v63  ;;  %737 = vmatpush.msrb.mxu2 %v606_v0 }
  0x7e   : > { %490 = vmatmul.f32.gmra.mxu2 %v300_v23  ;;  %531 = vmatmul.f32.gmra.mxu3 %v300_v23 }
  0x7f   : > { %655 = vmatpush.msrb.mxu0 %v574_v1  ;;  %778 = vmatpush.msrb.mxu3 %v622_v2 }
  0x80   : > { %408 = vmatmul.f32.gmra.mxu0 %v300_v23  ;;  %696 = vmatpush.msrb.mxu1 %v590_v3 }
  0x81   : > { %738 = vmatpush.msrb.mxu2 %v605_v4  ;;  %656 = vmatpush.msrb.mxu0 %v573_v5 }
  0x82   : > { %449 = vmatmul.f32.gmra.mxu1 %v300_v23  ;;  %779 = vmatpush.msrb.mxu3 %v621_v6 }
  0x83   : > { %697 = vmatpush.msrb.mxu1 %v589_v7 }
  0x86   : > { %493 = vmatmul.f32.gmra.mxu2 %v301_v36  ;;  %534 = vmatmul.f32.gmra.mxu3 %v301_v36 }
  0x88   : > { %411 = vmatmul.f32.gmra.mxu0 %v301_v36 }
  0x8a   : > { %452 = vmatmul.f32.gmra.mxu1 %v301_v36 }
  0x8e   : > { %496 = vmatmul.f32.gmra.mxu2 %v302_v49  ;;  %537 = vmatmul.f32.gmra.mxu3 %v302_v49 }
  0x90   : > { %414 = vmatmul.f32.gmra.mxu0 %v302_v49 }
  0x92   : > { %455 = vmatmul.f32.gmra.mxu1 %v302_v49 }
  0xd5   : > { %v394_v13 = vpop.f32.mrf.mxu0 }
  0xd6   : > { %v395_v15 = vadd.f32 %v394_v13, %v1415_v9 }
  0xd7   : > { %v435_v14 = vpop.f32.mrf.mxu1 }
  0xd8   : > { %v436_v16 = vadd.f32 %v435_v14, %v1417_v10  ;;  %v541_v20 = vmax.f32 %v395_v15, 0.0 }
  0xd9   : > { %v476_v17 = vpop.f32.mrf.mxu2  ;;  %v517_v18 = vpop.f32.mrf.mxu3 }
  0xda   : > { %v477_v19 = vadd.f32 %v476_v17, %v1419_v11  ;;  %v518_v21 = vadd.f32 %v517_v18, %v1421_v12  ;;  %v542_v22 = vmax.f32 %v436_v16, 0.0  ;;  %657 = vmatmul.f32.vlgmr.msrb.gmra.mxu0 %v541_v20 }
  0xdc   : > { %v543_v23 = vmax.f32 %v477_v19, 0.0  ;;  %v544_v24 = vmax.f32 %v518_v21, 0.0  ;;  %698 = vmatmul.f32.vlgmr.msrb.gmra.mxu1 %v542_v22 }
  0xdd   : > { %v397_v25 = vpop.f32.mrf.mxu0 }
  0xde   : > { %739 = vmatmul.f32.vlgmr.msrb.gmra.mxu2 %v543_v23  ;;  %780 = vmatmul.f32.vlgmr.msrb.gmra.mxu3 %v544_v24  ;;  %v398_v27 = vadd.f32 %v397_v25, %v1415_v9 }
  0xdf   : > { %v438_v26 = vpop.f32.mrf.mxu1 }
  0xe0   : > { %v439_v28 = vadd.f32 %v438_v26, %v1417_v10  ;;  %v545_v32 = vmax.f32 %v398_v27, 0.0 }
  0xe1   : > { %v479_v29 = vpop.f32.mrf.mxu2  ;;  %v520_v30 = vpop.f32.mrf.mxu3 }
  0xe2   : > { %v480_v31 = vadd.f32 %v479_v29, %v1419_v11  ;;  %v521_v33 = vadd.f32 %v520_v30, %v1421_v12  ;;  %v546_v34 = vmax.f32 %v439_v28, 0.0  ;;  %660 = vmatmul.f32.gmra.mxu0 %v545_v32 }
  0xe4   : > { %v547_v35 = vmax.f32 %v480_v31, 0.0  ;;  %v548_v36 = vmax.f32 %v521_v33, 0.0  ;;  %701 = vmatmul.f32.gmra.mxu1 %v546_v34 }
  0xe5   : > { %v400_v37 = vpop.f32.mrf.mxu0 }
  0xe6   : > { %742 = vmatmul.f32.gmra.mxu2 %v547_v35  ;;  %783 = vmatmul.f32.gmra.mxu3 %v548_v36  ;;  %v401_v39 = vadd.f32 %v400_v37, %v1415_v9 }
  0xe7   : > { %v441_v38 = vpop.f32.mrf.mxu1 }
  0xe8   : > { %v442_v40 = vadd.f32 %v441_v38, %v1417_v10  ;;  %v549_v44 = vmax.f32 %v401_v39, 0.0 }
  0xe9   : > { %v482_v41 = vpop.f32.mrf.mxu2  ;;  %v523_v42 = vpop.f32.mrf.mxu3 }
  0xea   : > { %v483_v43 = vadd.f32 %v482_v41, %v1419_v11  ;;  %v524_v45 = vadd.f32 %v523_v42, %v1421_v12  ;;  %v550_v46 = vmax.f32 %v442_v40, 0.0  ;;  %663 = vmatmul.f32.gmra.mxu0 %v549_v44 }
  0xec   : > { %v551_v47 = vmax.f32 %v483_v43, 0.0  ;;  %v552_v48 = vmax.f32 %v524_v45, 0.0  ;;  %704 = vmatmul.f32.gmra.mxu1 %v550_v46 }
  0xed   : > { %v403_v49 = vpop.f32.mrf.mxu0 }
  0xee   : > { %745 = vmatmul.f32.gmra.mxu2 %v551_v47  ;;  %786 = vmatmul.f32.gmra.mxu3 %v552_v48  ;;  %v404_v51 = vadd.f32 %v403_v49, %v1415_v9 }
  0xef   : > { %v444_v50 = vpop.f32.mrf.mxu1 }
  0xf0   : > { %v445_v52 = vadd.f32 %v444_v50, %v1417_v10  ;;  %v553_v56 = vmax.f32 %v404_v51, 0.0 }
  0xf1   : > { %v485_v53 = vpop.f32.mrf.mxu2  ;;  %v526_v54 = vpop.f32.mrf.mxu3 }
  0xf2   : > { %v486_v55 = vadd.f32 %v485_v53, %v1419_v11  ;;  %v527_v57 = vadd.f32 %v526_v54, %v1421_v12  ;;  %v554_v58 = vmax.f32 %v445_v52, 0.0  ;;  %666 = vmatmul.f32.gmra.mxu0 %v553_v56 }
  0xf4   : > { %v555_v59 = vmax.f32 %v486_v55, 0.0  ;;  %v556_v60 = vmax.f32 %v527_v57, 0.0  ;;  %707 = vmatmul.f32.gmra.mxu1 %v554_v58 }
  0xf5   : > { %v406_v61 = vpop.f32.mrf.mxu0 }
  0xf6   : > { %748 = vmatmul.f32.gmra.mxu2 %v555_v59  ;;  %789 = vmatmul.f32.gmra.mxu3 %v556_v60  ;;  %v407_v63 = vadd.f32 %v406_v61, %v1415_v9 }
  0xf7   : > { %v447_v62 = vpop.f32.mrf.mxu1 }
  0xf8   : > { %v448_v0 = vadd.f32 %v447_v62, %v1417_v10  ;;  %v557_v4 = vmax.f32 %v407_v63, 0.0 }
  0xf9   : > { %v488_v1 = vpop.f32.mrf.mxu2  ;;  %v529_v2 = vpop.f32.mrf.mxu3 }
  0xfa   : > { %v489_v3 = vadd.f32 %v488_v1, %v1419_v11  ;;  %v530_v5 = vadd.f32 %v529_v2, %v1421_v12  ;;  %v558_v6 = vmax.f32 %v448_v0, 0.0  ;;  %669 = vmatmul.f32.gmra.mxu0 %v557_v4 }
  0xfc   : > { %v559_v7 = vmax.f32 %v489_v3, 0.0  ;;  %v560_v8 = vmax.f32 %v530_v5, 0.0  ;;  %710 = vmatmul.f32.gmra.mxu1 %v558_v6 }
  0xfd   : > { %v409_v13 = vpop.f32.mrf.mxu0 }
  0xfe   : > { %751 = vmatmul.f32.gmra.mxu2 %v559_v7  ;;  %792 = vmatmul.f32.gmra.mxu3 %v560_v8  ;;  %v410_v15 = vadd.f32 %v409_v13, %v1415_v9 }
  0xff   : > { %v450_v14 = vpop.f32.mrf.mxu1 }
 0x100   : > { %v451_v16 = vadd.f32 %v450_v14, %v1417_v10  ;;  %v561_v20 = vmax.f32 %v410_v15, 0.0 }
 0x101   : > { %v491_v17 = vpop.f32.mrf.mxu2  ;;  %v532_v18 = vpop.f32.mrf.mxu3 }
 0x102   : > { %v492_v19 = vadd.f32 %v491_v17, %v1419_v11  ;;  %v533_v21 = vadd.f32 %v532_v18, %v1421_v12  ;;  %v562_v22 = vmax.f32 %v451_v16, 0.0  ;;  %672 = vmatmul.f32.gmra.mxu0 %v561_v20 }
 0x104   : > { %v563_v23 = vmax.f32 %v492_v19, 0.0  ;;  %v564_v24 = vmax.f32 %v533_v21, 0.0  ;;  %713 = vmatmul.f32.gmra.mxu1 %v562_v22 }
 0x105   : > { %v412_v25 = vpop.f32.mrf.mxu0 }
 0x106   : > { %754 = vmatmul.f32.gmra.mxu2 %v563_v23  ;;  %795 = vmatmul.f32.gmra.mxu3 %v564_v24  ;;  %v413_v27 = vadd.f32 %v412_v25, %v1415_v9 }
 0x107   : > { %v453_v26 = vpop.f32.mrf.mxu1 }
 0x108   : > { %v454_v28 = vadd.f32 %v453_v26, %v1417_v10  ;;  %v565_v32 = vmax.f32 %v413_v27, 0.0 }
 0x109   : > { %v494_v29 = vpop.f32.mrf.mxu2  ;;  %v535_v30 = vpop.f32.mrf.mxu3 }
 0x10a   : > { %v495_v31 = vadd.f32 %v494_v29, %v1419_v11  ;;  %v536_v33 = vadd.f32 %v535_v30, %v1421_v12  ;;  %v566_v34 = vmax.f32 %v454_v28, 0.0  ;;  %675 = vmatmul.f32.gmra.mxu0 %v565_v32 }
 0x10c   : > { %v567_v35 = vmax.f32 %v495_v31, 0.0  ;;  %v568_v36 = vmax.f32 %v536_v33, 0.0  ;;  %716 = vmatmul.f32.gmra.mxu1 %v566_v34 }
 0x10d   : > { %v415_v37 = vpop.f32.mrf.mxu0 }
 0x10e   : > { %757 = vmatmul.f32.gmra.mxu2 %v567_v35  ;;  %798 = vmatmul.f32.gmra.mxu3 %v568_v36  ;;  %v416_v39 = vadd.f32 %v415_v37, %v1415_v9  ;;  %v1458_v9 = vld [vmem:[%s1518_s4] ss:$0 sm:$0xff] }
 0x10f   : > { %v456_v38 = vpop.f32.mrf.mxu1 }
 0x110   : > { %v457_v40 = vadd.f32 %v456_v38, %v1417_v10  ;;  %v569_v44 = vmax.f32 %v416_v39, 0.0 }
 0x111   : > { %v497_v41 = vpop.f32.mrf.mxu2  ;;  %v538_v42 = vpop.f32.mrf.mxu3 }
 0x112   : > { %v498_v43 = vadd.f32 %v497_v41, %v1419_v11  ;;  %v539_v45 = vadd.f32 %v538_v42, %v1421_v12  ;;  %v570_v46 = vmax.f32 %v457_v40, 0.0  ;;  %678 = vmatmul.f32.gmra.mxu0 %v569_v44 }
 0x114   : > { %v571_v47 = vmax.f32 %v498_v43, 0.0  ;;  %v572_v48 = vmax.f32 %v539_v45, 0.0  ;;  %719 = vmatmul.f32.gmra.mxu1 %v570_v46 }
 0x116   : > { %760 = vmatmul.f32.gmra.mxu2 %v571_v47  ;;  %801 = vmatmul.f32.gmra.mxu3 %v572_v48 }
 0x157   : > { %v658_v10 = vpop.f32.mrf.mxu0 }
 0x158   : > { %v659_v11 = vadd.f32 %v1458_v9, %v658_v10 }
 0x159   : > { %v699_v49 = vpop.f32.mrf.mxu1 }
 0x15a   : > { %v700_v50 = vadd.f32 %v699_v49, %v659_v11 }
 0x15f   : > { %v661_v53 = vpop.f32.mrf.mxu0 }
 0x160   : > { %v662_v55 = vadd.f32 %v1458_v9, %v661_v53 }
 0x161   : > { %v740_v51 = vpop.f32.mrf.mxu2  ;;  %v781_v12 = vpop.f32.mrf.mxu3 }
 0x162   : > { %v741_v52 = vadd.f32 %v740_v51, %v700_v50  ;;  %v702_v54 = vpop.f32.mrf.mxu1 }
 0x163   : > { %v703_v57 = vadd.f32 %v702_v54, %v662_v55 }
 0x164   : > { %v782_v56 = vadd.f32 %v781_v12, %v741_v52 }
 0x166   : > { %805 = vst [vmem:[%s1464_s28] sm:$0xff] %v782_v56 }
 0x167   : > { %v664_v61 = vpop.f32.mrf.mxu0 }
 0x168   : > { %v665_v63 = vadd.f32 %v1458_v9, %v664_v61 }
 0x169   : > { %v743_v58 = vpop.f32.mrf.mxu2  ;;  %v784_v59 = vpop.f32.mrf.mxu3 }
 0x16a   : > { %v744_v60 = vadd.f32 %v743_v58, %v703_v57  ;;  %v705_v62 = vpop.f32.mrf.mxu1 }
 0x16b   : > { %v706_v1 = vadd.f32 %v705_v62, %v665_v63 }
 0x16c   : > { %v785_v0 = vadd.f32 %v784_v59, %v744_v60 }
 0x16e   : > { %806 = vst [vmem:[%s1464_s28 + $0x8] sm:$0xff] %v785_v0 }
 0x16f   : > { %v667_v5 = vpop.f32.mrf.mxu0 }
 0x170   : > { %v668_v7 = vadd.f32 %v1458_v9, %v667_v5 }
 0x171   : > { %v746_v2 = vpop.f32.mrf.mxu2  ;;  %v787_v3 = vpop.f32.mrf.mxu3 }
 0x172   : > { %v747_v4 = vadd.f32 %v746_v2, %v706_v1  ;;  %v708_v6 = vpop.f32.mrf.mxu1 }
 0x173   : > { %v709_v13 = vadd.f32 %v708_v6, %v668_v7 }
 0x174   : > { %v788_v8 = vadd.f32 %v787_v3, %v747_v4 }
 0x176   : > { %807 = vst [vmem:[%s1464_s28 + $0x10] sm:$0xff] %v788_v8 }
 0x177   : > { %v670_v17 = vpop.f32.mrf.mxu0 }
 0x178   : > { %v671_v19 = vadd.f32 %v1458_v9, %v670_v17 }
 0x179   : > { %v749_v14 = vpop.f32.mrf.mxu2  ;;  %v790_v15 = vpop.f32.mrf.mxu3 }
 0x17a   : > { %v750_v16 = vadd.f32 %v749_v14, %v709_v13  ;;  %v711_v18 = vpop.f32.mrf.mxu1 }
 0x17b   : > { %v712_v21 = vadd.f32 %v711_v18, %v671_v19 }
 0x17c   : > { %v791_v20 = vadd.f32 %v790_v15, %v750_v16 }
 0x17e   : > { %808 = vst [vmem:[%s1464_s28 + $0x18] sm:$0xff] %v791_v20 }
 0x17f   : > { %v673_v25 = vpop.f32.mrf.mxu0 }
 0x180   : > { %v674_v27 = vadd.f32 %v1458_v9, %v673_v25 }
 0x181   : > { %v752_v22 = vpop.f32.mrf.mxu2  ;;  %v793_v23 = vpop.f32.mrf.mxu3 }
 0x182   : > { %v753_v24 = vadd.f32 %v752_v22, %v712_v21  ;;  %v714_v26 = vpop.f32.mrf.mxu1 }
 0x183   : > { %v715_v29 = vadd.f32 %v714_v26, %v674_v27 }
 0x184   : > { %v794_v28 = vadd.f32 %v793_v23, %v753_v24 }
 0x186   : > { %809 = vst [vmem:[%s1464_s28 + $0x20] sm:$0xff] %v794_v28 }
 0x187   : > { %v676_v33 = vpop.f32.mrf.mxu0 }
 0x188   : > { %v677_v35 = vadd.f32 %v1458_v9, %v676_v33 }
 0x189   : > { %v755_v30 = vpop.f32.mrf.mxu2  ;;  %v796_v31 = vpop.f32.mrf.mxu3 }
 0x18a   : > { %v756_v32 = vadd.f32 %v755_v30, %v715_v29  ;;  %v717_v34 = vpop.f32.mrf.mxu1 }
 0x18b   : > { %v718_v37 = vadd.f32 %v717_v34, %v677_v35 }
 0x18c   : > { %v797_v36 = vadd.f32 %v796_v31, %v756_v32 }
 0x18e   : > { %810 = vst [vmem:[%s1464_s28 + $0x28] sm:$0xff] %v797_v36 }
 0x18f   : > { %v679_v41 = vpop.f32.mrf.mxu0 }
 0x190   : > { %v680_v42 = vadd.f32 %v1458_v9, %v679_v41 }
 0x191   : > { %v758_v38 = vpop.f32.mrf.mxu2  ;;  %v799_v39 = vpop.f32.mrf.mxu3 }
 0x192   : > { %v759_v40 = vadd.f32 %v758_v38, %v718_v37  ;;  %v720_v43 = vpop.f32.mrf.mxu1 }
 0x193   : > { %v721_v45 = vadd.f32 %v720_v43, %v680_v42 }
 0x194   : > { %v800_v44 = vadd.f32 %v799_v39, %v759_v40 }
 0x196   : > { %811 = vst [vmem:[%s1464_s28 + $0x30] sm:$0xff] %v800_v44 }
 0x199   : > { %v761_v46 = vpop.f32.mrf.mxu2  ;;  %v802_v47 = vpop.f32.mrf.mxu3 }
 0x19a   : > { %v762_v48 = vadd.f32 %v761_v46, %v721_v45 }
 0x19c   : > { %v803_v10 = vadd.f32 %v802_v47, %v762_v48 }
 0x19e   : > { %812 = vst [vmem:[%s1464_s28 + $0x38] sm:$0xff] %v803_v10 }
 0x19f   : > { %1184 = shalt.err (!%p1181_p10)
}
 0x1a0   : > { %s1240_s17 = smov 128   ;;  %s1241_s29 = smov 8  }
 0x1a1   : > { %967 = dma.vmem_to_hbm [thread:$0]  (%p1357_p3), %s827_s13, 1024, %s829_s12, %s814_s22, %s1240_s17, %s1240_s17, %s1241_s29  }
 0x1a2 PF: > { %s843_s28 = sand.u32 1, %s1219_s18   ;;  %p1528_p12 = scmp.ge.s32.totalorder %s1231_s21, 2 }
 0x1a3   : > { %s844_s16 = scalar_lea.sflag [#allocation4], %s843_s28 }
 0x1a4   : > { %p984_p13 = pnand %p1528_p12, %p1307_p6 }
 0x1a6   : > { %p985_p0 = pneg %p984_p13 }
 0x1a8   : > { %1214 = dma.done.wait (%p985_p0), %s844_s16, 1024  }
 0x1a9   : > { %1216 = vsyncadd (%p985_p0), %s844_s16, 4294966272  ;;  %p20_p5 = scmp.ge.s32.totalorder %s1344_s30, 4   ;;  %s1529_s18 = smov %s1223_s19 }
 0x1aa   : > { %s1530_s19 = smov %s1227_s20  ;;  %s1531_s20 = smov %s1353_s9 }
 0x1ab   : > { %s1532_s21 = smov %s1344_s30  ;;  %22 = sbr.rel (!%p20_p5) target bundleno = 7 (0x7), region = 97 }
 0x1b0   :  { %850 = vsyncpa [#allocation3], 1 }
 0x1b1   :  { %852 = vsyncpa [#allocation3 + $0x1], 1 }
 0x1b2   :  { %853 = vsyncpa [#allocation6], 1 }
 0x1b3   :  { %854 = vsyncpa [#allocation9], 1 }
 0x1b4   :  { %855 = vsyncpa [#allocation4], 1 }
 0x1b5   :  { %857 = vsyncpa [#allocation4 + $0x1], 1 }

</bundles_post_ra>
